<compile_context>
chip_gen: v7x
topology: tpu7x:2x2x1
jax: 0.10.0
libtpu: 0.0.40
codegen_flags: <defaults>
</compile_context>

<pallas_src>
import functools

import jax
import jax.numpy as jnp
from jax import lax
from jax.experimental import pallas as pl
from jax.experimental.pallas import tpu as pltpu


# ----------------------------------------------------------------------------
# Kernel
# ----------------------------------------------------------------------------
def _self_attn_kernel(x_ref, wqk_ref, bqk_ref, out_ref, q_ref, k_ref,
                      *, attn_c, tn, n_real):
    j = pl.program_id(1)

    # Fused projection (one (2A, C) @ (C, Npad) MXU push), once per batch.
    # Column-tile axis is "arbitrary", so j == 0 runs first for every batch and
    # the q/k scratch is valid for all later column tiles of that batch.
    @pl.when(j == 0)
    def _():
        qk = jnp.dot(wqk_ref[...], x_ref[0],
                     preferred_element_type=jnp.float32) + bqk_ref[...]  # (2A, Npad)
        q_ref[...] = qk[:attn_c]
        k_ref[...] = qk[attn_c:]

    # Only the TN key columns of this output tile are needed.
    col0 = pl.multiple_of(j * tn, tn)
    k_tile = k_ref[:, pl.ds(col0, tn)]                        # (A, TN)

    # energy[i, jt] = sum_a q[a, i] * k[a, jt] -> (Npad, TN); contraction on the
    # leading axis avoids materializing q.T (no XLU transpose / relayout).
    energy = lax.dot_general(
        q_ref[...], k_tile,
        dimension_numbers=(((0,), (0,)), ((), ())),
        preferred_element_type=jnp.float32)

    n_pad = q_ref.shape[1]
    if n_real != n_pad:
        # Padded query rows carry a bias-only projection; they must not leak
        # into the per-column softmax denominator.
        row = lax.broadcasted_iota(jnp.int32, energy.shape, 0)
        energy = jnp.where(row < n_real, energy, -jnp.inf)

    # Softmax over axis 0 (rows) == PyTorch Softmax(dim=1); row axis is untiled
    # so the reduction is complete within this column tile.
    m = jnp.max(energy, axis=0, keepdims=True)
    e = jnp.exp(energy - m)
    denom = jnp.sum(e, axis=0, keepdims=True)
    # approx=False keeps full f32 accuracy (test tolerance 1e-5).
    out_ref[0] = e * pl.reciprocal(denom, approx=False)


def _pick_tn(n_pad, budget_bytes=40 * 1024 * 1024):
    """Column-tile width: multiple of 128 dividing n_pad, sized so that the
    double-buffered (n_pad, TN) f32 output tiles + energy temp stay under the
    VMEM budget (48 MiB scoped limit, safe on v7x's 64 MiB physical VMEM)."""
    max_tn = max(128, budget_bytes // (3 * 4 * n_pad))
    tn = 128
    while tn * 2 <= 512 and tn * 2 <= max_tn and n_pad % (tn * 2) == 0:
        tn *= 2
    return tn


def self_attention_pallas(x_flat, wqk, bqk, *, n_real):
    """x_flat: (B, C, Npad) f32, Npad % 128 == 0; wqk: (2A, C); bqk: (2A, 1).
    Returns attn of shape (B, Npad, Npad); caller slices to (B, N, N)."""
    B, C, n_pad = x_flat.shape
    two_a = wqk.shape[0]
    attn_c = two_a // 2
    tn = _pick_tn(n_pad)

    kernel = functools.partial(
        _self_attn_kernel, attn_c=attn_c, tn=tn, n_real=n_real)

    return pl.pallas_call(
        kernel,
        out_shape=jax.ShapeDtypeStruct((B, n_pad, n_pad), jnp.float32),
        grid_spec=pltpu.PrefetchScalarGridSpec(
            num_scalar_prefetch=0,
            grid=(B, n_pad // tn),
            in_specs=[
                # x block index only changes with b -> DMA'd once per batch.
                pl.BlockSpec((1, C, n_pad), lambda b, j: (b, 0, 0)),   # x
                pl.BlockSpec((two_a, C), lambda b, j: (0, 0)),         # fused Wq|Wk
                pl.BlockSpec((two_a, 1), lambda b, j: (0, 0)),         # fused bq|bk
            ],
            # Lane-dense (Npad, TN) column tile of the attention map.
            out_specs=pl.BlockSpec((1, n_pad, tn), lambda b, j: (b, 0, j)),
            scratch_shapes=[
                pltpu.VMEM((attn_c, n_pad), jnp.float32),   # q, persists over j
                pltpu.VMEM((attn_c, n_pad), jnp.float32),   # k, persists over j
            ],
        ),
        compiler_params=pltpu.CompilerParams(
            # j must be "arbitrary": q/k scratch computed at j == 0 is reused by
            # later column tiles of the same batch. Batch axis shards across
            # v7x's two TensorCores.
            dimension_semantics=("parallel", "arbitrary"),
            vmem_limit_bytes=48 * 1024 * 1024,
        ),
    )(x_flat, wqk, bqk)


# ----------------------------------------------------------------------------
# Glue: deterministic parameter init + spectral normalization (1 power iter,
# matching torch.nn.utils.spectral_norm on a 1x1 conv weight -> plain matmul).
# ----------------------------------------------------------------------------
def _l2_normalize(v, eps=1e-12):
    return v / (jnp.linalg.norm(v) + eps)


def spectral_normalize(w, u0):
    """w: (out_c, in_c, 1, 1) conv weight; u0: (out_c,) power-iter vector."""
    out_c = w.shape[0]
    w_mat = w.reshape(out_c, -1)                 # (out_c, in_c)
    v = _l2_normalize(w_mat.T @ u0)              # (in_c,)
    u = _l2_normalize(w_mat @ v)                 # (out_c,)
    sigma = u @ (w_mat @ v)
    return w_mat / sigma                         # 1x1 conv == matmul


def make_params(key, in_c):
    attn_c = in_c // 8
    kq, kk, kbq, kbk, kuq, kuk = jax.random.split(key, 6)
    bound = 1.0 / jnp.sqrt(in_c)
    wq = jax.random.uniform(kq, (attn_c, in_c, 1, 1), jnp.float32, -bound, bound)
    wk = jax.random.uniform(kk, (attn_c, in_c, 1, 1), jnp.float32, -bound, bound)
    bq = jax.random.uniform(kbq, (attn_c,), jnp.float32, -bound, bound)
    bk = jax.random.uniform(kbk, (attn_c,), jnp.float32, -bound, bound)
    uq = _l2_normalize(jax.random.normal(kuq, (attn_c,), jnp.float32))
    uk = _l2_normalize(jax.random.normal(kuk, (attn_c,), jnp.float32))
    wq_sn = spectral_normalize(wq, uq)           # (attn_c, in_c)
    wk_sn = spectral_normalize(wk, uk)
    return wq_sn, bq.reshape(attn_c, 1), wk_sn, bk.reshape(attn_c, 1)


def self_attention_forward(x_nchw, params):
    """x_nchw: (B, C, H, W) float32 -> attn (B, H*W, H*W)."""
    wq, bq, wk, bk = params
    B, C, H, W = x_nchw.shape
    n = H * W
    n_pad = ((n + 127) // 128) * 128             # lane-dense output stores
    x_flat = x_nchw.reshape(B, C, n)
    if n_pad != n:
        x_flat = jnp.pad(x_flat, ((0, 0), (0, 0), (0, n_pad - n)))
    wqk = jnp.concatenate([wq, wk], axis=0)      # (2A, C) fused projection
    bqk = jnp.concatenate([bq, bk], axis=0)      # (2A, 1)
    attn = self_attention_pallas(x_flat, wqk, bqk, n_real=n)
    if n_pad != n:
        attn = attn[:, :n, :n]
    return attn


# Pure-JAX reference for verification.
def self_attention_ref(x_nchw, params):
    wq, bq, wk, bk = params
    B, C, H, W = x_nchw.shape
    x_flat = x_nchw.reshape(B, C, H * W)
    q = jnp.einsum("ac,bcn->ban", wq, x_flat) + bq[None, :, :]
    k = jnp.einsum("ac,bcn->ban", wk, x_flat) + bk[None, :, :]
    energy = jnp.einsum("bam,ban->bmn", q, k)
    return jax.nn.softmax(energy, axis=1)


if __name__ == "__main__":
    key = jax.random.PRNGKey(0)
    kx, kp = jax.random.split(key)

    B, C, H, W = 2, 16, 8, 8          # in_c=16 -> attn_c=2; N = 64 (padded to 128)
    x = jax.random.normal(kx, (B, C, H, W), jnp.float32)
    params = make_params(kp, C)

    attn = self_attention_forward(x, params)
    attn = jax.block_until_ready(attn)

    ref = self_attention_ref(x, params)
    assert attn.shape == (B, H * W, H * W)
    assert jnp.allclose(attn, ref, atol=1e-5, rtol=1e-5)

    print("KERNEL_OK")
</pallas_src>

<mosaic_0001>
module attributes {stable_mosaic.version = 11 : i64} {
  func.func @_self_attn_kernel(%arg0: i32, %arg1: i32, %arg2: memref<1x16x128xf32, #tpu.memory_space<vmem>>, %arg3: memref<4x16xf32, #tpu.memory_space<vmem>>, %arg4: memref<4x1xf32, #tpu.memory_space<vmem>>, %arg5: memref<1x128x128xf32, #tpu.memory_space<vmem>>, %arg6: memref<2x128xf32, #tpu.memory_space<vmem>>, %arg7: memref<2x128xf32, #tpu.memory_space<vmem>>) attributes {dimension_semantics = [#tpu.dimension_semantics<parallel>, #tpu.dimension_semantics<arbitrary>], iteration_bounds = array<i64: 2, 1>, scalar_prefetch = 0 : i64, scratch_operands = 2 : i64, tpu.core_type = #tpu.core_type<tc>, window_params = [{transform_indices = @transform_0, window_bounds = array<i64: 1, 16, 128>}, {pipeline_mode = #tpu.pipeline_mode<synchronous>, transform_indices = @transform_1, window_bounds = array<i64: 4, 16>}, {pipeline_mode = #tpu.pipeline_mode<synchronous>, transform_indices = @transform_2, window_bounds = array<i64: 4, 1>}, {transform_indices = @transform_3, window_bounds = array<i64: 1, 128, 128>}]} {
    %c0_i32 = arith.constant 0 : i32
    %0 = arith.cmpi eq, %arg1, %c0_i32 : i32
    %1 = arith.extui %0 : i1 to i32
    %c0_i32_0 = arith.constant 0 : i32
    %2 = arith.cmpi ne, %1, %c0_i32_0 : i32
    scf.if %2 {
      %c0_9 = arith.constant 0 : index
      %c0_10 = arith.constant 0 : index
      %27 = vector.load %arg3[%c0_9, %c0_10] : memref<4x16xf32, #tpu.memory_space<vmem>>, vector<4x16xf32>
      %c0_11 = arith.constant 0 : index
      %c0_12 = arith.constant 0 : index
      %c0_13 = arith.constant 0 : index
      %28 = vector.load %arg2[%c0_11, %c0_12, %c0_13] : memref<1x16x128xf32, #tpu.memory_space<vmem>>, vector<1x16x128xf32>
      %29 = vector.shape_cast %28 : vector<1x16x128xf32> to vector<16x128xf32>
      %cst_14 = arith.constant dense<0.000000e+00> : vector<4x128xf32>
      %30 = tpu.matmul %27, %29, %cst_14 {dimension_numbers = #tpu.dot_dimension_numbers<[1], [0], [0], [1], [0, 0, 1, 1], [], []>} : vector<4x16xf32>, vector<16x128xf32>, vector<4x128xf32> -> vector<4x128xf32>
      %c0_15 = arith.constant 0 : index
      %c0_16 = arith.constant 0 : index
      %31 = vector.load %arg4[%c0_15, %c0_16] : memref<4x1xf32, #tpu.memory_space<vmem>>, vector<4x1xf32>
      %32 = vector.broadcast %31 : vector<4x1xf32> to vector<4x128xf32>
      %33 = arith.addf %30, %32 : vector<4x128xf32>
      %34 = vector.extract_strided_slice %33 {offsets = [0, 0], sizes = [2, 128], strides = [1, 1]} : vector<4x128xf32> to vector<2x128xf32>
      %c0_17 = arith.constant 0 : index
      %c0_18 = arith.constant 0 : index
      %35 = vector.load %arg6[%c0_17, %c0_18] : memref<2x128xf32, #tpu.memory_space<vmem>>, vector<2x128xf32>
      tpu.vector_store %arg6[%c0_17, %c0_18], %34 {strides = array<i32>} : memref<2x128xf32, #tpu.memory_space<vmem>>, vector<2x128xf32>,
      %36 = vector.extract_strided_slice %33 {offsets = [2, 0], sizes = [2, 128], strides = [1, 1]} : vector<4x128xf32> to vector<2x128xf32>
      %c0_19 = arith.constant 0 : index
      %c0_20 = arith.constant 0 : index
      %37 = vector.load %arg7[%c0_19, %c0_20] : memref<2x128xf32, #tpu.memory_space<vmem>>, vector<2x128xf32>
      tpu.vector_store %arg7[%c0_19, %c0_20], %36 {strides = array<i32>} : memref<2x128xf32, #tpu.memory_space<vmem>>, vector<2x128xf32>,
    } else {
    }
    %c128_i32 = arith.constant 128 : i32
    %3 = arith.muli %arg1, %c128_i32 : i32
    %4 = tpu.assume_multiple %3, 128 : i32
    %c0 = arith.constant 0 : index
    %5 = arith.index_cast %4 : i32 to index
    %6 = vector.load %arg7[%c0, %5] : memref<2x128xf32, #tpu.memory_space<vmem>>, vector<2x128xf32>
    %c0_1 = arith.constant 0 : index
    %c0_2 = arith.constant 0 : index
    %7 = vector.load %arg6[%c0_1, %c0_2] : memref<2x128xf32, #tpu.memory_space<vmem>>, vector<2x128xf32>
    %cst = arith.constant dense<0.000000e+00> : vector<128x128xf32>
    %8 = tpu.matmul %7, %6, %cst {dimension_numbers = #tpu.dot_dimension_numbers<[0], [0], [1], [1], [0, 1, 1, 1], [], []>} : vector<2x128xf32>, vector<2x128xf32>, vector<128x128xf32> -> vector<128x128xf32>
    %9 = tpu.iota {dimensions = array<i32: 0>} : vector<128x128xi32>
    %c64_i32 = arith.constant 64 : i32
    %10 = vector.broadcast %c64_i32 : i32 to vector<128x128xi32>
    %11 = arith.cmpi slt, %9, %10 : vector<128x128xi32>
    %cst_3 = arith.constant 0xFF800000 : f32
    %12 = vector.broadcast %cst_3 : f32 to vector<128x128xf32>
    %13 = arith.select %11, %8, %12 : vector<128x128xi1>, vector<128x128xf32>
    %cst_4 = arith.constant dense<0xFF800000> : vector<128xf32>
    %14 = vector.multi_reduction <maximumf>, %13, %cst_4 [0] : vector<128x128xf32> to vector<128xf32>
    %15 = vector.shape_cast %14 : vector<128xf32> to vector<1x128xf32>
    %16 = vector.broadcast %15 : vector<1x128xf32> to vector<128x128xf32>
    %17 = arith.subf %13, %16 : vector<128x128xf32>
    %18 = math.exp %17 : vector<128x128xf32>
    %cst_5 = arith.constant dense<0.000000e+00> : vector<128xf32>
    %19 = vector.multi_reduction <add>, %18, %cst_5 [0] : vector<128x128xf32> to vector<128xf32>
    %20 = vector.shape_cast %19 : vector<128xf32> to vector<1x128xf32>
    %21 = tpu.reciprocal %20 : vector<1x128xf32> -> vector<1x128xf32>
    %22 = vector.broadcast %21 : vector<1x128xf32> to vector<128x128xf32>
    %23 = arith.mulf %18, %22 : vector<128x128xf32>
    %c0_6 = arith.constant 0 : index
    %c0_7 = arith.constant 0 : index
    %c0_8 = arith.constant 0 : index
    %24 = vector.load %arg5[%c0_6, %c0_7, %c0_8] : memref<1x128x128xf32, #tpu.memory_space<vmem>>, vector<1x128x128xf32>
    %25 = vector.shape_cast %24 : vector<1x128x128xf32> to vector<128x128xf32>
    %26 = vector.shape_cast %23 : vector<128x128xf32> to vector<1x128x128xf32>
    tpu.vector_store %arg5[%c0_6, %c0_7, %c0_8], %26 {strides = array<i32>} : memref<1x128x128xf32, #tpu.memory_space<vmem>>, vector<1x128x128xf32>,
    return
  }
  func.func @transform_0(%arg0: i32, %arg1: i32) -> (i32, i32, i32) {
    %c0_i32 = arith.constant 0 : i32
    %c0_i32_0 = arith.constant 0 : i32
    %c0_i32_1 = arith.constant 0 : i32
    return %arg0, %c0_i32, %c0_i32_0 : i32, i32, i32
  }
  func.func @transform_1(%arg0: i32, %arg1: i32) -> (i32, i32) {
    %c0_i32 = arith.constant 0 : i32
    %c0_i32_0 = arith.constant 0 : i32
    %c0_i32_1 = arith.constant 0 : i32
    return %c0_i32, %c0_i32_0 : i32, i32
  }
  func.func @transform_2(%arg0: i32, %arg1: i32) -> (i32, i32) {
    %c0_i32 = arith.constant 0 : i32
    %c0_i32_0 = arith.constant 0 : i32
    %c0_i32_1 = arith.constant 0 : i32
    return %c0_i32, %c0_i32_0 : i32, i32
  }
  func.func @transform_3(%arg0: i32, %arg1: i32) -> (i32, i32, i32) {
    %c0_i32 = arith.constant 0 : i32
    %c0_i32_0 = arith.constant 0 : i32
    return %arg0, %c0_i32, %arg1 : i32, i32, i32
  }
}

</mosaic_0001>

<bundles_post_ra>
// kernel: tpu_custom_call.1
= control target key start
LH: loop header
LB: loop body
LE: loop exit
PB: predicated region body
PF: predicated region fallthrough
CT: control target
= control target key end

     0   :  { %8 = vsyncpa [#allocation5], 0  ;;  %s1325_s0 = inlined_call_operand.hbm [shape: f32[2,16,128], index: 0, kind: input, shape index: {}]   ;;  %s1326_s1 = inlined_call_operand.vmem [shape: f32[4,16], index: 1, kind: input, shape index: {}]   ;;  %s1327_s2 = inlined_call_operand.vmem [shape: f32[4,1], index: 2, kind: input, shape index: {}]   ;;  %s1328_s3 = inlined_call_operand.hbm [shape: f32[2,128,128], index: 3, kind: output, shape index: {}]  }
   0x1   :  { %10 = vsyncpa [#allocation5 + $0x1], 0 }
   0x2   :  { %11 = vsyncpa [#allocation6], 0 }
   0x3   :  { %13 = vsyncpa [#allocation6 + $0x1], 0  ;;  %s1127_s12 = smov 0   ;;  %s1129_s13 = smov 0  }
   0x4   :  { %s1131_s14 = smov 0   ;;  %s1133_s15 = smov 0  }
   0x5   :  { %s1135_s16 = smov 0   ;;  %s1137_s17 = smov 0  }
   0x6 LB: > { %s799_s18 = sadd.s32 4294967295, %s1095_s17   ;;  %s800_s19 = sadd.s32 4294967294, %s1095_s17   ;;  %s1095_s17 = sphi %s1137_s17, %s19_s17   ;;  %s1091_s16 = sphi %s1135_s16, %s1343_s16   ;;  %s1087_s15 = sphi %s1133_s15, %s1342_s15   ;;  %s1083_s14 = sphi %s1131_s14, %s1341_s14   ;;  %s1079_s13 = sphi %s1129_s13, %s1340_s13   ;;  %s1075_s12 = sphi %s1127_s12, %s1339_s12  }
   0x7   : > { %s31_s20 = sadd.s32 1, %s1091_s16  ;;  %s38_s21 = sadd.s32 1, %s1083_s14 }
   0x8   : > { %p33_p0 = scmp.ge.s32.totalorder %s31_s20, 2  ;;  %p45_p1 = scmp.ne.s32.totalorder %s1083_s14, %s1079_s13 }
   0x9   : > { %p46_p2 = scmp.eq.s32.totalorder %s1095_s17, 0  ;;  %p51_p3 = scmp.ne.s32.totalorder %s1079_s13, %s1075_s12 }
   0xa   : > { %s1345_s20 = smov (%p33_p0, %s31_s20), 0  ;;  %p52_p5 = scmp.eq.s32.totalorder %s799_s18, 0 }
   0xb   : > { %p1168_p4 = por %p46_p2, %p45_p1  ;;  %s35_s23 = ssub.s32 %s1091_s16, %s1345_s20 }
   0xc   : > { %p119_p6 = scmp.eq.s32.totalorder %s799_s18, 1  ;;  %p36_p7 = scmp.eq.s32.totalorder %s35_s23, 0 }
   0xd   : > { %p1174_p8 = por %p52_p5, %p51_p3  ;;  %p125_p10 = scmp.eq.s32.totalorder %s800_s19, 1 }
   0xe   : > { %p1178_p9 = por %p119_p6, %p45_p1  ;;  %p904_p13 = scmp.lt.s32.totalorder %s1095_s17, 2 }
   0xf   : > { %s1183_s26 = scalar_select %p36_p7, %s1083_s14, %s38_s21  }
  0x10   : > { %s1332_s25 = scalar_select %p1178_p9, 1, 0 }
  0x11   : > { %p1185_p11 = por %p125_p10, %p51_p3  ;;  %s151_s28 = sand.u32 1, %s1083_s14  }
  0x12   : > { %s803_s29 = sshll.u32 %s151_s28, 4  ;;  %s832_s30 = sshll.u32 %s1091_s16, 8 }
  0x13   : > { %s1333_s27 = scalar_select %p1185_p11, 1, 0 }
  0x14   : > { %s1196_s6 = scalar_lea.hbm %s1325_s0, %s832_s30  ;;  %s155_s7 = scalar_lea.vmem [#allocation4], %s803_s29 }
  0x15   : > { %s162_s8 = sshll.u32 %s155_s7, 4  ;;  %p1202_p0 = pnand %p904_p13, %p1168_p4  ;;  %s1198_s8 = int_to_ptr.vmem [resolvable:$true] %s162_s8 }
  0x16   : > { %s1207_s10 = scalar_lea.sflag [#allocation5], %s151_s28  ;;  %s983_s11 = scalar_lea.hbm %s1196_s6, 256 }
  0x17   : > { %p984_p2 = scmp.ne.s32.totalorder %s1196_s6, %s983_s11  ;;  %p985_p3 = pneg %p1202_p0 }
  0x18   : > { %s988_s21 = scalar_lea.hbm %s1325_s0, 512  ;;  %p989_p4 = scmp.lt.u32.totalorder %s1196_s6, %s1325_s0 }
  0x19   : > { %p986_p5 = pnand %p985_p3, %p984_p2  ;;  %p990_p7 = scmp.lt.u32.totalorder %s988_s21, %s983_s11 }
  0x1a   : > { %p992_p13 = scmp.lt.u32.totalorder %s983_s11, %s1196_s6 }
  0x1b   : > { %p987_p6 = pneg %p986_p5  ;;  %p991_p10 = por %p990_p7, %p989_p4 }
  0x1d   : > { %p993_p12 = por %p992_p13, %p991_p10 }
  0x1f   : > { %p994_p1 = pnand %p993_p12, %p987_p6 }
  0x21   : > { %997 = shalt.err (!%p994_p1)
}
  0x22   : > { %s998_s28 = scalar_lea.vmem %s1198_s8, 256  ;;  %s1097_s29 = smov [#allocation4]  }
  0x23   : > { %p999_p2 = scmp.ne.s32.totalorder %s1198_s8, %s998_s28  ;;  %s1003_s30 = sshll.u32 %s1097_s29, 4  ;;  %s1004_s30 = int_to_ptr.vmem [resolvable:$false] %s1003_s30 }
  0x24   : > { %s1005_s4 = scalar_lea.vmem %s1004_s30, 512  ;;  %p1006_p9 = scmp.lt.s32.totalorder %s1198_s8, %s1004_s30 }
  0x25   : > { %p1001_p5 = pnand %p999_p2, %p985_p3  ;;  %p1007_p4 = scmp.lt.s32.totalorder %s1005_s4, %s998_s28 }
  0x27   : > { %p1002_p11 = pneg %p1001_p5  ;;  %p1008_p7 = por %p1007_p4, %p1006_p9 }
  0x29   : > { %p1009_p10 = pnand %p1008_p7, %p1002_p11 }
  0x2b   : > { %1012 = shalt.err (!%p1009_p10)
}
  0x2c   : > { %s1098_s5 = smov 128   ;;  %s1099_s7 = smov 8  }
  0x2d   : > { %899 = dma.hbm_to_vmem [thread:$0]  (!%p1202_p0), %s1196_s6, 256, %s1198_s8, %s1207_s10, %s1098_s5, %s1098_s5, %s1099_s7  }
  0x2e   : > { %p170_p12 = scmp.lt.s32.totalorder %s1095_s17, 3  ;;  %p1335_p1 = scmp.ge.s32.totalorder %s1095_s17, 1 }
  0x30   : > { %p171_p3 = pnand %p1335_p1, %p170_p12 }
  0x31   : > { %s1239_s11 = sand.u32 (!%p171_p3), 1, %s1079_s13  }
  0x32   : > { %174 = sbr.rel (%p171_p3) target bundleno = 769 (0x301), region = 32  ;;  %s807_s18 = sshll.u32 (!%p171_p3), %s1239_s11, 4 }
  0x33   : > { %s177_s19 = scalar_lea.sflag (!%p171_p3), [#allocation5], %s1239_s11  ;;  %s180_s21 = scalar_lea.vmem (!%p171_p3), [#allocation4], %s807_s18 }
  0x39   : > { %1066 = dma.done.wait (%p1174_p8), %s177_s19, 256  }
  0x3a   : > { %1068 = vsyncadd (%p1174_p8), %s177_s19, 4294967040  ;;  %v1100_v0 = vmov 0.0|0.0   ;;  %vm1101_vm0 = vmmov 0   ;;  %v1102_v1 = vmov 0.0   ;;  %v1103_v2 = vmov 0   ;;  %v208_v3 = vld [vmem:[%s180_s21] sm:$0xff] }
  0x3b   : > { %887 = vmatprep.subr.bf16.mxu0 %v1100_v0  ;;  %858 = vmatprep.mubr.msk.f32.mxu0 %vm1101_vm0, %v1102_v1  ;;  %v209_v4 = vld [vmem:[%s180_s21 + $0x8] sm:$0xff]  ;;  %vm216_vm1 = vcmask 130048   ;;  %vm379_vm2 = vcmask 1041408   ;;  %vm330_vm3 = vcmask 15360   ;;  %s808_s24 = sshll.u32 %s1239_s11, 7  ;;  %s833_s22 = sshll.u32 %s1087_s15, 11 }
  0x3c   : > { %962 = vset.pattern.permute.xlu0 %v1103_v2  ;;  %v888_v5 = vpack.c.bf16 %v209_v4, %v208_v3  ;;  %v210_v6 = vld [vmem:[%s1327_s2] sm:$0xf]  ;;  %s202_s23 = scalar_lea.vmem [#allocation7], %s808_s24  ;;  %s1274_s4 = scalar_lea.hbm %s1328_s3, %s833_s22 }
  0x3d   : > { %213 = vperm.xlu0 %962, %v210_v6   ;;  %v207_v7 = vld [vmem:[%s1326_s1] sm:$0xf]  ;;  %s715_s28 = sshll.u32 %s202_s23, 4  ;;  %s701_s15 = scalar_lea.sflag [#allocation6], %s1239_s11  ;;  %s1276_s28 = int_to_ptr.vmem [resolvable:$true] %s715_s28 }
  0x3e   : > { %889 = vmatpush3.bf16.msra.mxu0 %v888_v5  ;;  %s1013_s5 = scalar_lea.vmem %s1276_s28, 2048  ;;  %p1336_p9 = scmp.ne.s32.totalorder %s1332_s25, 0 }
  0x3f   : > { %p1014_p8 = scmp.ne.s32.totalorder %s1276_s28, %s1013_s5  ;;  %s1104_s7 = smov [#allocation7]  }
  0x40   : > { %s1017_s18 = sshll.u32 %s1104_s7, 4  ;;  %s1018_s18 = int_to_ptr.vmem [resolvable:$false] %s1017_s18 }
  0x41   : > { %859 = vmatmul.mubr.msk.f32.vlgmr.msra.gmra.mrb[0].mxu0 %vm216_vm1, %v207_v7  ;;  %p1015_p11 = pnand %p1014_p8, %p1336_p9  ;;  %s1019_s19 = scalar_lea.vmem %s1018_s18, 4096 }
  0x42   : > { %p1020_p6 = scmp.lt.s32.totalorder %s1276_s28, %s1018_s18  ;;  %p1021_p13 = scmp.lt.s32.totalorder %s1019_s19, %s1013_s5 }
  0x43   : > { %p1016_p0 = pneg %p1015_p11 }
  0x44   : > { %p1022_p2 = por %p1021_p13, %p1020_p6 }
  0x46   : > { %p1023_p5 = pnand %p1022_p2, %p1016_p0 }
  0xbc   : > { %v214_v8 = vpop.permute.xlu0 %213 }
 0x114   : > { %v286_v9 = vpop.f32.mrb[0].mxu0 }
 0x115   : > { %v287_v10 = vadd.f32 %v286_v9, %v214_v8  ;;  %v860_v11 = vpop.f32.mrb[1].mxu0 }
 0x117   : > { %290 = vst [vmem:[#allocation2] sm:$0x3] %v287_v10  ;;  %291 = vst [vmem:[#allocation3 - $0x2] sm:$0xc] %v287_v10 }
 0x11e   : > { %v296_v12 = vld [vmem:[#allocation3] sm:$0x3]  ;;  %v297_v13 = vld [vmem:[#allocation2] sm:$0x3] }
 0x11f   : > { %861 = vmatprep.subr.msk.mxu0 %vm379_vm2, %v296_v12  ;;  %890 = vmatprep.subr.msk.mxu1 %vm379_vm2, %v296_v12 }
 0x120   : > { %298 = vxpose.xlu0.b32.start.end [1/1] (short) %v297_v13, 128  ;;  %862 = vmatpush3.msk.msra.mxu0 %vm379_vm2, %v296_v12 }
 0x121   : > { %891 = vmatpush3.msk.msra.mxu1 %vm379_vm2, %v296_v12 }
 0x1a0   : > { %v314_v14 = vpop.trf.xlu0 }
 0x1a1   : > { %863 = vmatprep.mubr.msk.f32.mxu0 %vm330_vm3, %v314_v14 }
 0x1a4   : > { %v315_v15 = vpop.trf.xlu0 }
 0x1a5   : > { %864 = vmatmul.mubr.msk.f32.vlgmr.msra.gmra.mrb[2].mxu0 %vm330_vm3, %v315_v15 }
 0x1a8   : > { %v316_v16 = vpop.trf.xlu0 }
 0x1a9   : > { %866 = vmatprep.mubr.msk.f32.mxu0 %vm330_vm3, %v316_v16 }
 0x1ac   : > { %v317_v17 = vpop.trf.xlu0 }
 0x1ad   : > { %867 = vmatmul.mubr.msk.f32.gmra.mrb[4].mxu0 %vm330_vm3, %v317_v17 }
 0x1b0   : > { %v318_v18 = vpop.trf.xlu0 }
 0x1b1   : > { %869 = vmatprep.mubr.msk.f32.mxu0 %vm330_vm3, %v318_v18 }
 0x1b4   : > { %v319_v19 = vpop.trf.xlu0 }
 0x1b5   : > { %870 = vmatmul.mubr.msk.f32.gmra.mrb[6].mxu0 %vm330_vm3, %v319_v19 }
 0x1b8   : > { %v320_v20 = vpop.trf.xlu0 }
 0x1b9   : > { %872 = vmatprep.mubr.msk.f32.mxu1 %vm330_vm3, %v320_v20 }
 0x1bc   : > { %v321_v21 = vpop.trf.xlu0 }
 0x1bd   : > { %873 = vmatmul.mubr.msk.f32.vlgmr.msra.gmra.mrb[0].mxu1 %vm330_vm3, %v321_v21 }
 0x1c0   : > { %v322_v22 = vpop.trf.xlu0 }
 0x1c1   : > { %875 = vmatprep.mubr.msk.f32.mxu1 %vm330_vm3, %v322_v22 }
 0x1c4   : > { %v323_v23 = vpop.trf.xlu0 }
 0x1c5   : > { %876 = vmatmul.mubr.msk.f32.gmra.mrb[2].mxu1 %vm330_vm3, %v323_v23 }
 0x1c8   : > { %v324_v24 = vpop.trf.xlu0 }
 0x1c9   : > { %878 = vmatprep.mubr.msk.f32.mxu1 %vm330_vm3, %v324_v24 }
 0x1cc   : > { %v325_v25 = vpop.trf.xlu0 }
 0x1cd   : > { %879 = vmatmul.mubr.msk.f32.gmra.mrb[4].mxu1 %vm330_vm3, %v325_v25 }
 0x1d0   : > { %v326_v26 = vpop.trf.xlu0 }
 0x1d1   : > { %881 = vmatprep.mubr.msk.f32.mxu1 %vm330_vm3, %v326_v26 }
 0x1d4   : > { %v327_v27 = vpop.trf.xlu0 }
 0x1d5   : > { %882 = vmatmul.mubr.msk.f32.gmra.mrb[6].mxu1 %vm330_vm3, %v327_v27 }
 0x1d8   : > { %v328_v28 = vpop.trf.xlu0 }
 0x1d9   : > { %884 = vmatprep.mubr.msk.f32.mxu1 %vm330_vm3, %v328_v28 }
 0x1dc   : > { %v329_v29 = vpop.trf.xlu0 }
 0x1dd   : > { %885 = vmatmul.mubr.msk.f32.gmra.mrb[8].mxu1 %vm330_vm3, %v329_v29 }
 0x278   : > { %v865_v30 = vpop.f32.mrb[2].mxu0 }
 0x279   : > { %v449_v31 = vpop.f32.mrb[3].mxu0 }
 0x280   : > { %v868_v32 = vpop.f32.mrb[4].mxu0 }
 0x281   : > { %v459_v33 = vpop.f32.mrb[5].mxu0 }
 0x288   : > { %v871_v34 = vpop.f32.mrb[6].mxu0 }
 0x289   : > { %v578_v35 = vmax.f32 %v865_v30, %v871_v34  ;;  %v469_v36 = vpop.f32.mrb[7].mxu0 }
 0x28a   : > { %v577_v37 = vmax.f32 %v449_v31, %v469_v36 }
 0x28c   : > { %v589_v38 = vmax.f32 %v577_v37, %v578_v35 }
 0x290   : > { %v874_v39 = vpop.f32.mrb[0].mxu1 }
 0x291   : > { %v580_v40 = vmax.f32 %v868_v32, %v874_v39  ;;  %v479_v41 = vpop.f32.mrb[1].mxu1 }
 0x292   : > { %v579_v42 = vmax.f32 %v459_v33, %v479_v41 }
 0x294   : > { %v590_v43 = vmax.f32 %v579_v42, %v580_v40 }
 0x296   : > { %v591_v44 = vmax.f32 %v589_v38, %v590_v43 }
 0x298   : > { %v592_v45 = vrot.slane %v591_v44, 4  ;;  %v877_v46 = vpop.f32.mrb[2].mxu1 }
 0x299   : > { %v489_v47 = vpop.f32.mrb[3].mxu1 }
 0x29a   : > { %v593_v48 = vmax.f32 %v591_v44, %v592_v45 }
 0x29c   : > { %v594_v49 = vrot.slane %v593_v48, 2 }
 0x29e   : > { %v595_v50 = vmax.f32 %v593_v48, %v594_v49 }
 0x2a0   : > { %v596_v51 = vrot.slane %v595_v50, 1  ;;  %v880_v52 = vpop.f32.mrb[4].mxu1 }
 0x2a1   : > { %v499_v53 = vpop.f32.mrb[5].mxu1 }
 0x2a2   : > { %v597_v54 = vmax.f32 %v595_v50, %v596_v51 }
 0x2a4   : > { %v598_v55 = vsub.f32 %v449_v31, %v597_v54  ;;  %v599_v56 = vsub.f32 %v865_v30, %v597_v54  ;;  %v600_v57 = vsub.f32 %v459_v33, %v597_v54  ;;  %v601_v58 = vsub.f32 %v868_v32, %v597_v54 }
 0x2a5   : > { %v602_v59 = vsub.f32 %v469_v36, %v597_v54  ;;  %v603_v60 = vsub.f32 %v871_v34, %v597_v54  ;;  %v604_v61 = vsub.f32 %v479_v41, %v597_v54  ;;  %v605_v62 = vsub.f32 %v874_v39, %v597_v54 }
 0x2a6   : > { %v614_v63 = vmul.f32 1.442695, %v598_v55  ;;  %v616_v0 = vmul.f32 1.442695, %v599_v56  ;;  %v618_v1 = vmul.f32 1.442695, %v600_v57 }
 0x2a7   : > { %v620_v2 = vmul.f32 1.442695, %v601_v58  ;;  %v622_v5 = vmul.f32 1.442695, %v602_v59  ;;  %v624_v6 = vmul.f32 1.442695, %v603_v60 }
 0x2a8   : > { %963 = vpow2.f32 %v614_v63  ;;  %v883_v3 = vpop.f32.mrb[6].mxu1  ;;  %v606_v7 = vsub.f32 -inf, %v597_v54  ;;  %v626_v8 = vmul.f32 1.442695, %v604_v61  ;;  %v628_v10 = vmul.f32 1.442695, %v605_v62 }
 0x2a9   : > { %965 = vpow2.f32 %v616_v0  ;;  %v509_v4 = vpop.f32.mrb[7].mxu1 }
 0x2aa   : > { %967 = vpow2.f32 %v618_v1  ;;  %v630_v14 = vmul.f32 1.442695, %v606_v7 }
 0x2ab   : > { %969 = vpow2.f32 %v620_v2 }
 0x2ac   : > { %971 = vpow2.f32 %v622_v5 }
 0x2ad   : > { %973 = vpow2.f32 %v624_v6 }
 0x2ae   : > { %975 = vpow2.f32 %v626_v8 }
 0x2af   : > { %977 = vpow2.f32 %v628_v10 }
 0x2b0   : > { %v886_v9 = vpop.f32.mrb[8].mxu1  ;;  %979 = vpow2.f32 %v630_v14 }
 0x2b1   : > { %v519_v11 = vpop.f32.mrb[9].mxu1 }
 0x2b2   : > { %v964_v12 = vpop.eup %963 }
 0x2b3   : > { %v966_v13 = vpop.eup %965 }
 0x2b4   : > { %v646_v15 = vadd.f32 %v966_v13, %v964_v12  ;;  %v968_v16 = vpop.eup %967 }
 0x2b5   : > { %v970_v18 = vpop.eup %969 }
 0x2b6   : > { %v647_v17 = vadd.f32 %v968_v16, %v646_v15  ;;  %v972_v20 = vpop.eup %971 }
 0x2b7   : > { %v974_v22 = vpop.eup %973 }
 0x2b8   : > { %v648_v19 = vadd.f32 %v970_v18, %v647_v17  ;;  %v976_v24 = vpop.eup %975 }
 0x2b9   : > { %v978_v26 = vpop.eup %977 }
 0x2ba   : > { %v649_v21 = vadd.f32 %v972_v20, %v648_v19  ;;  %v980_v28 = vpop.eup %979 }
 0x2bc   : > { %v650_v23 = vadd.f32 %v974_v22, %v649_v21 }
 0x2be   : > { %v651_v25 = vadd.f32 %v976_v24, %v650_v23 }
 0x2c0   : > { %v652_v27 = vadd.f32 %v978_v26, %v651_v25 }
 0x2c2   : > { %v653_v29 = vadd.f32 %v980_v28, %v652_v27 }
 0x2c4   : > { %v654_v30 = vadd.f32 %v980_v28, %v653_v29 }
 0x2c6   : > { %v655_v31 = vadd.f32 %v980_v28, %v654_v30 }
 0x2c8   : > { %v656_v32 = vadd.f32 %v980_v28, %v655_v31 }
 0x2ca   : > { %v657_v33 = vadd.f32 %v980_v28, %v656_v32 }
 0x2cc   : > { %v658_v34 = vadd.f32 %v980_v28, %v657_v33 }
 0x2ce   : > { %v659_v35 = vadd.f32 %v980_v28, %v658_v34 }
 0x2d0   : > { %v660_v36 = vadd.f32 %v980_v28, %v659_v35 }
 0x2d2   : > { %v661_v37 = vrot.slane %v660_v36, 4 }
 0x2d4   : > { %v662_v38 = vadd.f32 %v661_v37, %v660_v36 }
 0x2d6   : > { %v663_v39 = vrot.slane %v662_v38, 2 }
 0x2d8   : > { %v664_v40 = vadd.f32 %v663_v39, %v662_v38 }
 0x2da   : > { %v665_v41 = vrot.slane %v664_v40, 1 }
 0x2dc   : > { %v666_v42 = vadd.f32 %v665_v41, %v664_v40 }
 0x2de   : > { %981 = vrcp.f32 %v666_v42 }
 0x2e8   : > { %v982_v43 = vpop.eup %981 }
 0x2e9   : > { %v668_v44 = vmul.f32 %v982_v43, %v964_v12  ;;  %v669_v45 = vmul.f32 %v982_v43, %v966_v13  ;;  %v670_v46 = vmul.f32 %v982_v43, %v968_v16  ;;  %v671_v47 = vmul.f32 %v982_v43, %v970_v18 }
 0x2ea   : > { %v672_v48 = vmul.f32 %v982_v43, %v972_v20  ;;  %v673_v49 = vmul.f32 %v982_v43, %v974_v22  ;;  %v674_v50 = vmul.f32 %v982_v43, %v976_v24  ;;  %v675_v51 = vmul.f32 %v982_v43, %v978_v26 }
 0x2eb   : > { %684 = vst [vmem:[%s202_s23] sm:$0xff] %v668_v44  ;;  %685 = vst [vmem:[%s202_s23 + $0x8] sm:$0xff] %v669_v45  ;;  %v676_v52 = vmul.f32 %v982_v43, %v980_v28 }
 0x2ec   : > { %686 = vst [vmem:[%s202_s23 + $0x10] sm:$0xff] %v670_v46  ;;  %687 = vst [vmem:[%s202_s23 + $0x18] sm:$0xff] %v671_v47 }
 0x2ed   : > { %688 = vst [vmem:[%s202_s23 + $0x20] sm:$0xff] %v672_v48  ;;  %689 = vst [vmem:[%s202_s23 + $0x28] sm:$0xff] %v673_v49 }
 0x2ee   : > { %690 = vst [vmem:[%s202_s23 + $0x30] sm:$0xff] %v674_v50  ;;  %691 = vst [vmem:[%s202_s23 + $0x38] sm:$0xff] %v675_v51 }
 0x2ef   : > { %692 = vst [vmem:[%s202_s23 + $0x40] sm:$0xff] %v676_v52  ;;  %693 = vst [vmem:[%s202_s23 + $0x48] sm:$0xff] %v676_v52 }
 0x2f0   : > { %694 = vst [vmem:[%s202_s23 + $0x50] sm:$0xff] %v676_v52  ;;  %695 = vst [vmem:[%s202_s23 + $0x58] sm:$0xff] %v676_v52 }
 0x2f1   : > { %696 = vst [vmem:[%s202_s23 + $0x60] sm:$0xff] %v676_v52  ;;  %697 = vst [vmem:[%s202_s23 + $0x68] sm:$0xff] %v676_v52 }
 0x2f2   : > { %698 = vst [vmem:[%s202_s23 + $0x70] sm:$0xff] %v676_v52  ;;  %699 = vst [vmem:[%s202_s23 + $0x78] sm:$0xff] %v676_v52 }
 0x2f3   : > { %1026 = shalt.err (!%p1023_p5)
}
 0x2f4   : > { %s1027_s21 = scalar_lea.hbm %s1274_s4, 2048  ;;  %s1031_s9 = scalar_lea.hbm %s1328_s3, 4096 }
 0x2f5   : > { %p1028_p4 = scmp.ne.s32.totalorder %s1274_s4, %s1027_s21  ;;  %p1032_p12 = scmp.lt.u32.totalorder %s1274_s4, %s1328_s3 }
 0x2f6   : > { %p1033_p1 = scmp.lt.u32.totalorder %s1031_s9, %s1027_s21  ;;  %p1035_p8 = scmp.lt.u32.totalorder %s1027_s21, %s1274_s4 }
 0x2f7   : > { %p1029_p7 = pnand %p1028_p4, %p1336_p9 }
 0x2f8   : > { %p1034_p3 = por %p1033_p1, %p1032_p12 }
 0x2f9   : > { %p1030_p10 = pneg %p1029_p7 }
 0x2fa   : > { %p1036_p11 = por %p1035_p8, %p1034_p3 }
 0x2fc   : > { %p1037_p0 = pnand %p1036_p11, %p1030_p10 }
 0x2fe   : > { %1040 = shalt.err (!%p1037_p0)
}
 0x2ff   : > { %s1105_s22 = smov 128   ;;  %s1106_s23 = smov 8  }
 0x300   : > { %894 = dma.vmem_to_hbm [thread:$0]  (%p1336_p9), %s1276_s28, 2048, %s1274_s4, %s701_s15, %s1105_s22, %s1105_s22, %s1106_s23  }
 0x301 PF: > { %s730_s29 = sand.u32 1, %s1075_s12   ;;  %p1337_p6 = scmp.ne.s32.totalorder %s1333_s27, 0 }
 0x302   : > { %p1338_p13 = scmp.ge.s32.totalorder %s1095_s17, 2  ;;  %s731_s30 = scalar_lea.sflag [#allocation6], %s730_s29 }
 0x304   : > { %p901_p2 = pnand %p1338_p13, %p1337_p6 }
 0x306   : > { %1070 = dma.done.wait (!%p901_p2), %s731_s30, 2048  }
 0x307   : > { %1072 = vsyncadd (!%p901_p2), %s731_s30, 4294965248  ;;  %s19_s17 = sadd.s32 1, %s1095_s17   ;;  %s1339_s12 = smov %s1079_s13 }
 0x308   : > { %p16_p5 = scmp.ge.s32.totalorder %s19_s17, 4   ;;  %s1340_s13 = smov %s1083_s14 }
 0x309   : > { %s1341_s14 = smov %s1183_s26  ;;  %s1342_s15 = smov %s1091_s16 }
 0x30a   : > { %s1343_s16 = smov %s1345_s20  ;;  %18 = sbr.rel (!%p16_p5) target bundleno = 6 (0x6), region = 82 }
 0x311   :  { %736 = vsyncpa [#allocation5], 1 }
 0x312   :  { %738 = vsyncpa [#allocation5 + $0x1], 1 }
 0x313   :  { %739 = vsyncpa [#allocation6], 1 }
 0x314   :  { %741 = vsyncpa [#allocation6 + $0x1], 1 }

</bundles_post_ra>
